<compile_context>
chip_gen: v7x
topology: tpu7x:2x2x1
jax: 0.10.0
libtpu: 0.0.40
codegen_flags: <defaults>
</compile_context>

<pallas_src>
import jax
import jax.numpy as jnp
from jax.experimental import pallas as pl
from jax.experimental.pallas import tpu as pltpu


def conv1x1_sigmoid_kernel(x_ref, w_ref, b_ref, o_ref):
    # x_ref: (rows, Cin) f32   w_ref: (Cin, Cout_blk) bf16
    # b_ref: (1, Cout_blk) f32 o_ref: (rows, Cout_blk) f32
    x_bf16 = x_ref[...].astype(jnp.bfloat16)          # tiny (rows*Cin) cast, VPU
    y = jnp.dot(x_bf16, w_ref[...],                    # MXU, f32 accumulate
                preferred_element_type=jnp.float32)
    y = y + b_ref[...]
    o_ref[...] = jax.nn.sigmoid(y).astype(o_ref.dtype)


def conv1x1_sigmoid(x_nchw, weight, bias, *, cout_tiles=2):
    """x_nchw: (N, Cin, H, W) with H == W == 1 (1x1 conv, stride 1).
    weight: (Cout, Cin, 1, 1), bias: (Cout,). Returns (N, Cout, H, W)."""
    N, Cin, H, W = x_nchw.shape
    Cout = weight.shape[0]
    assert H == 1 and W == 1, "this kernel specializes the 1x1-spatial case"

    rows = N * H * W
    x2d = x_nchw.reshape(rows, Cin)                                   # (rows, Cin) f32
    # One-time parameter prep (constant-foldable): (Cout,Cin) -> (Cin,Cout), bf16.
    w2d = jnp.transpose(weight.reshape(Cout, Cin)).astype(jnp.bfloat16)  # (Cin, Cout)
    b2d = bias.reshape(1, Cout).astype(jnp.float32)                   # (1, Cout)

    assert Cout % cout_tiles == 0
    tcout = Cout // cout_tiles
    assert tcout % 128 == 0, "Cout tile must stay lane-dense"

    bytes_accessed = (
        x2d.size * 4            # x (f32)
        + w2d.size * 2          # weight (bf16) -- the dominant stream
        + b2d.size * 4          # bias (f32)
        + rows * Cout * 4       # output (f32)
    )
    cost = pl.CostEstimate(
        flops=2 * rows * Cin * Cout,
        transcendentals=rows * Cout,
        bytes_accessed=bytes_accessed,
    )

    out = pl.pallas_call(
        conv1x1_sigmoid_kernel,
        out_shape=jax.ShapeDtypeStruct((rows, Cout), x_nchw.dtype),
        grid_spec=pltpu.PrefetchScalarGridSpec(
            num_scalar_prefetch=0,
            grid=(cout_tiles,),
            in_specs=[
                pl.BlockSpec((rows, Cin), lambda i: (0, 0)),    # x: same block every step
                pl.BlockSpec((Cin, tcout), lambda i: (0, i)),   # weight: Cout-tiled, lane-dense
                pl.BlockSpec((1, tcout), lambda i: (0, i)),     # bias: Cout-tiled
            ],
            out_specs=pl.BlockSpec((rows, tcout), lambda i: (0, i)),
        ),
        compiler_params=pltpu.CompilerParams(
            dimension_semantics=("parallel",),   # megacore sharding on v7x
        ),
        cost_estimate=cost,
    )(x2d, w2d, b2d)

    return out.reshape(N, Cout, H, W)


def reference(x_nchw, weight, bias):
    """Pure-f32 reference for the PyTorch module's forward."""
    N, Cin, H, W = x_nchw.shape
    Cout = weight.shape[0]
    y = jnp.einsum("nchw,oc->nohw", x_nchw, weight.reshape(Cout, Cin))
    y = y + bias.reshape(1, Cout, 1, 1)
    return jax.nn.sigmoid(y)


if __name__ == "__main__":
    key = jax.random.PRNGKey(0)
    k_x, k_w, k_b = jax.random.split(key, 3)

    # Shapes from the PyTorch module: Conv2d(160, 3840, k=1) on (1, 160, 1, 1).
    N, Cin, Cout, H, W = 1, 160, 3840, 1, 1

    x = jax.random.normal(k_x, (N, Cin, H, W), dtype=jnp.float32)
    # deterministic parameter init (synthetic; roughly PyTorch's uniform scale)
    bound = 1.0 / (Cin ** 0.5)
    weight = jax.random.uniform(k_w, (Cout, Cin, 1, 1),
                                minval=-bound, maxval=bound, dtype=jnp.float32)
    bias = jax.random.uniform(k_b, (Cout,),
                              minval=-bound, maxval=bound, dtype=jnp.float32)

    out = conv1x1_sigmoid(x, weight, bias)
    out = jax.block_until_ready(out)

    ref = reference(x, weight, bias)
    assert out.shape == (N, Cout, H, W)
    # bf16 weight storage is a numerics-visible quantization; accumulate and
    # sigmoid are f32, so error stays in the low-1e-3 range after the sigmoid.
    assert jnp.allclose(out, ref, atol=2e-2, rtol=2e-2), (
        float(jnp.max(jnp.abs(out - ref))))

    print("KERNEL_OK")
</pallas_src>

<mosaic_0001>
module attributes {stable_mosaic.version = 11 : i64} {
  func.func @conv1x1_sigmoid_kernel(%arg0: i32, %arg1: memref<1x160xf32, #tpu.memory_space<vmem>>, %arg2: memref<160x1920xbf16, #tpu.memory_space<vmem>>, %arg3: memref<1x1920xf32, #tpu.memory_space<vmem>>, %arg4: memref<1x1920xf32, #tpu.memory_space<vmem>>) attributes {dimension_semantics = [#tpu.dimension_semantics<parallel>], iteration_bounds = array<i64: 2>, scalar_prefetch = 0 : i64, scratch_operands = 0 : i64, tpu.core_type = #tpu.core_type<tc>, window_params = [{pipeline_mode = #tpu.pipeline_mode<synchronous>, transform_indices = @transform_0, window_bounds = array<i64: 1, 160>}, {transform_indices = @transform_1, window_bounds = array<i64: 160, 1920>}, {transform_indices = @transform_2, window_bounds = array<i64: 1, 1920>}, {transform_indices = @transform_3, window_bounds = array<i64: 1, 1920>}]} {
    %c0 = arith.constant 0 : index
    %c0_0 = arith.constant 0 : index
    %0 = vector.load %arg1[%c0, %c0_0] : memref<1x160xf32, #tpu.memory_space<vmem>>, vector<1x160xf32>
    %1 = arith.truncf %0 : vector<1x160xf32> to vector<1x160xbf16>
    %c0_1 = arith.constant 0 : index
    %c0_2 = arith.constant 0 : index
    %2 = vector.load %arg2[%c0_1, %c0_2] : memref<160x1920xbf16, #tpu.memory_space<vmem>>, vector<160x1920xbf16>
    %cst = arith.constant dense<0.000000e+00> : vector<1x1920xf32>
    %3 = tpu.matmul %1, %2, %cst {dimension_numbers = #tpu.dot_dimension_numbers<[1], [0], [0], [1], [0, 0, 1, 1], [], []>} : vector<1x160xbf16>, vector<160x1920xbf16>, vector<1x1920xf32> -> vector<1x1920xf32>
    %c0_3 = arith.constant 0 : index
    %c0_4 = arith.constant 0 : index
    %4 = vector.load %arg3[%c0_3, %c0_4] : memref<1x1920xf32, #tpu.memory_space<vmem>>, vector<1x1920xf32>
    %5 = arith.addf %3, %4 : vector<1x1920xf32>
    %6 = arith.negf %5 : vector<1x1920xf32>
    %7 = math.exp %6 : vector<1x1920xf32>
    %cst_5 = arith.constant 1.000000e+00 : f32
    %8 = vector.broadcast %cst_5 : f32 to vector<1x1920xf32>
    %9 = arith.addf %8, %7 : vector<1x1920xf32>
    %10 = arith.divf %8, %9 : vector<1x1920xf32>
    %c0_6 = arith.constant 0 : index
    %c0_7 = arith.constant 0 : index
    %11 = vector.load %arg4[%c0_6, %c0_7] : memref<1x1920xf32, #tpu.memory_space<vmem>>, vector<1x1920xf32>
    tpu.vector_store %arg4[%c0_6, %c0_7], %10 {strides = array<i32>} : memref<1x1920xf32, #tpu.memory_space<vmem>>, vector<1x1920xf32>,
    return
  }
  func.func @transform_0(%arg0: i32) -> (i32, i32) {
    %c0_i32 = arith.constant 0 : i32
    %c0_i32_0 = arith.constant 0 : i32
    %c0_i32_1 = arith.constant 0 : i32
    return %c0_i32, %c0_i32_0 : i32, i32
  }
  func.func @transform_1(%arg0: i32) -> (i32, i32) {
    %c0_i32 = arith.constant 0 : i32
    %c0_i32_0 = arith.constant 0 : i32
    return %c0_i32, %arg0 : i32, i32
  }
  func.func @transform_2(%arg0: i32) -> (i32, i32) {
    %c0_i32 = arith.constant 0 : i32
    %c0_i32_0 = arith.constant 0 : i32
    return %c0_i32, %arg0 : i32, i32
  }
  func.func @transform_3(%arg0: i32) -> (i32, i32) {
    %c0_i32 = arith.constant 0 : i32
    %c0_i32_0 = arith.constant 0 : i32
    return %c0_i32, %arg0 : i32, i32
  }
}

</mosaic_0001>

<bundles_post_ra>
// kernel: tpu_custom_call.1
= control target key start
LH: loop header
LB: loop body
LE: loop exit
PB: predicated region body
PF: predicated region fallthrough
CT: control target
= control target key end

     0   :  { %8 = vsyncpa [#allocation3], 0  ;;  %s3133_s0 = inlined_call_operand.hbm [shape: f32[1,160], index: 0, kind: input, shape index: {}]   ;;  %s3134_s1 = inlined_call_operand.hbm [shape: bf16[160,3840], index: 1, kind: input, shape index: {}]   ;;  %s3135_s2 = inlined_call_operand.hbm [shape: f32[1,3840], index: 2, kind: input, shape index: {}]   ;;  %s3136_s3 = inlined_call_operand.hbm [shape: f32[1,3840], index: 3, kind: output, shape index: {}]  }
   0x1   :  { %9 = vsyncpa [#allocation6], 0 }
   0x2   :  { %11 = vsyncpa [#allocation6 + $0x1], 0 }
   0x3   :  { %12 = vsyncpa [#allocation4], 0 }
   0x4   :  { %14 = vsyncpa [#allocation4 + $0x1], 0  ;;  %s2639_s12 = smov 0   ;;  %s2641_s13 = smov 0  }
   0x5   :  { %s2643_s14 = smov 0   ;;  %s2645_s15 = smov 0  }
   0x6 LB: > { %s2660_s16 = sadd.s32 1, %s2608_s15   ;;  %s48_s17 = sadd.s32 1, %s2604_s14  ;;  %s2608_s15 = sphi %s2645_s15, %s3163_s15   ;;  %s2604_s14 = sphi %s2643_s14, %s3162_s14   ;;  %s2600_s13 = sphi %s2641_s13, %s3161_s13   ;;  %s2596_s12 = sphi %s2639_s12, %s3160_s12  }
   0x7   : > { %s45_s18 = ssub.s32 %s2608_s15, %s2660_s16  ;;  %p55_p0 = scmp.ne.s32.totalorder %s2604_s14, %s2600_s13 }
   0x8   : > { %p46_p1 = scmp.eq.s32.totalorder %s45_s18, 0  ;;  %p56_p2 = scmp.eq.s32.totalorder %s2608_s15, 0 }
   0x9   : > { %p2129_p4 = scmp.lt.s32.totalorder %s2608_s15, 2  ;;  %s148_s20 = sand.u32 1, %s2608_s15  }
   0xa   : > { %s2671_s19 = scalar_select %p46_p1, %s2604_s14, %s48_s17  }
   0xb   : > { %p57_p5 = por %p56_p2, %p55_p0  ;;  %s150_s21 = sand.u32 1, %s2604_s14  }
   0xc   : > { %s2099_s22 = smul.u32 1200, %s150_s21  ;;  %s2692_s30 = scalar_lea.sflag [#allocation6], %s148_s20 }
   0xd   : > { %p2680_p6 = pnand %p2129_p4, %p57_p5  ;;  %s2096_s24 = smul.u32 960, %s2608_s15 }
   0xe   : > { %s152_s28 = scalar_lea.vmem [#allocation5], %s2099_s22  ;;  %s2455_s7 = scalar_lea.hbm %s3134_s1, 38400 }
   0xf   : > { %s3144_s23 = scalar_select %p2680_p6, 1, 0 }
  0x10   : > { %s2688_s27 = scalar_lea.hbm %s3134_s1, %s2096_s24  ;;  %s159_s29 = sshll.u32 %s152_s28, 4  ;;  %s2690_s29 = int_to_ptr.vmem [resolvable:$true] %s159_s29 }
  0x11   : > { %s2450_s4 = scalar_lea.hbm %s2688_s27, 19200  ;;  %p3138_p8 = pneg %p2680_p6 }
  0x12   : > { %p2451_p7 = scmp.ne.s32.totalorder %s2688_s27, %s2450_s4  ;;  %p2456_p11 = scmp.lt.u32.totalorder %s2688_s27, %s3134_s1 }
  0x13   : > { %p2457_p12 = scmp.lt.u32.totalorder %s2455_s7, %s2450_s4  ;;  %p2459_p1 = scmp.lt.u32.totalorder %s2450_s4, %s2688_s27 }
  0x14   : > { %p2453_p9 = pnand %p3138_p8, %p2451_p7 }
  0x15   : > { %p2458_p13 = por %p2457_p12, %p2456_p11 }
  0x16   : > { %p2454_p10 = pneg %p2453_p9 }
  0x17   : > { %p2460_p2 = por %p2459_p1, %p2458_p13 }
  0x19   : > { %p2461_p4 = pnand %p2460_p2, %p2454_p10 }
  0x1b   : > { %2464 = shalt.err (!%p2461_p4)
}
  0x1c   : > { %s2465_s10 = scalar_lea.vmem %s2690_s29, 19200  ;;  %s2610_s11 = smov [#allocation5]  }
  0x1d   : > { %p2466_p5 = scmp.ne.s32.totalorder %s2690_s29, %s2465_s10  ;;  %s2470_s17 = sshll.u32 %s2610_s11, 4  ;;  %s2471_s17 = int_to_ptr.vmem [resolvable:$false] %s2470_s17 }
  0x1e   : > { %s2472_s18 = scalar_lea.vmem %s2471_s17, 38400  ;;  %p2473_p3 = scmp.lt.s32.totalorder %s2690_s29, %s2471_s17 }
  0x1f   : > { %p2468_p7 = pnand %p2466_p5, %p3138_p8  ;;  %p2474_p11 = scmp.lt.s32.totalorder %s2472_s18, %s2465_s10 }
  0x21   : > { %p2469_p9 = pneg %p2468_p7  ;;  %p2475_p12 = por %p2474_p11, %p2473_p3 }
  0x23   : > { %p2476_p13 = pnand %p2475_p12, %p2469_p9 }
  0x25   : > { %2479 = shalt.err (!%p2476_p13)
}
  0x26   : > { %s2611_s20 = smov 1920   ;;  %s2612_s22 = smov 960  }
  0x27   : > { %s2613_s24 = smov 60   ;;  %s2721_s25 = sadd.s32 4294967295, %s2608_s15  }
  0x28   : > { %2120 = dma.hbm_to_vmem [thread:$0]  (!%p2680_p6), %s2688_s27, 19200, %s2690_s29, %s2692_s30, %s2611_s20, %s2612_s22, %s2613_s24  }
  0x29   : > { %s1912_s26 = sadd.s32 4294967294, %s2608_s15   ;;  %p61_p3 = scmp.ne.s32.totalorder %s2600_s13, %s2596_s12 }
  0x2a   : > { %p3137_p10 = scmp.eq.s32.totalorder %s2721_s25, 0  ;;  %p111_p1 = scmp.eq.s32.totalorder %s2721_s25, 1 }
  0x2b   : > { %p117_p2 = scmp.eq.s32.totalorder %s1912_s26, 1  ;;  %p1913_p4 = scmp.ge.s32.totalorder %s2608_s15, 1 }
  0x2c   : > { %p2731_p5 = por %p3137_p10, %p61_p3  ;;  %p2738_p7 = por %p111_p1, %p55_p0 }
  0x2d   : > { %p2742_p9 = por %p117_p2, %p61_p3  ;;  %p124_p11 = scmp.lt.s32.totalorder %s2608_s15, 3 }
  0x2e   : > { %s3145_s28 = scalar_select %p2731_p5, 1, 0 }
  0x2f   : > { %s3146_s27 = scalar_select %p2738_p7, 1, 0 }
  0x30   : > { %s3147_s29 = scalar_select %p2742_p9, 1, 0 }
  0x31   : > { %p2747_p12 = pnand %p1913_p4, %p124_p11  ;;  %s2614_s5 = smov [#allocation2]  }
  0x32   : > { %s137_s6 = sshll.u32 %s2614_s5, 4  ;;  %s2100_s7 = smul.u32 15, %s150_s21  ;;  %s138_s6 = int_to_ptr.vmem [resolvable:$true] %s137_s6 }
  0x33   : > { %s3148_s4 = scalar_select %p2747_p12, 1, 0 }
  0x34   : > { %p2113_p13 = pneg %p2747_p12  ;;  %s2097_s8 = smul.u32 240, %s2608_s15 }
  0x35   : > { %s173_s18 = scalar_lea.vmem [#allocation7], %s2100_s7  ;;  %s2480_s24 = scalar_lea.hbm %s3133_s0, 32 }
  0x36   : > { %p2758_p0 = pnand %p2113_p13, %p3137_p10  ;;  %s2765_s17 = scalar_lea.hbm %s3135_s2, %s2097_s8 }
  0x37   : > { %s181_s20 = sshll.u32 %s173_s18, 4  ;;  %p2481_p3 = scmp.ne.s32.totalorder %s3133_s0, %s2480_s24  ;;  %s2767_s20 = int_to_ptr.vmem [resolvable:$true] %s181_s20 }
  0x38   : > { %p2482_p1 = pneg %p2758_p0  ;;  %p2487_p11 = scmp.lt.u32.totalorder %s2480_s24, %s3133_s0 }
  0x3a   : > { %p2483_p2 = pnand %p2482_p1, %p2481_p3 }
  0x3c   : > { %p2484_p4 = pneg %p2483_p2 }
  0x3e   : > { %p2489_p13 = pnand %p2487_p11, %p2484_p4 }
  0x40   : > { %2492 = shalt.err (!%p2489_p13)
}
  0x41   : > { %s2493_s7 = scalar_lea.vmem %s138_s6, 32  ;;  %p2501_p7 = scmp.lt.s32.totalorder %s138_s6, %s138_s6 }
  0x42   : > { %p2494_p10 = scmp.ne.s32.totalorder %s138_s6, %s2493_s7  ;;  %p2502_p5 = scmp.lt.s32.totalorder %s2493_s7, %s2493_s7 }
  0x44   : > { %p2496_p8 = pnand %p2494_p10, %p2482_p1  ;;  %p2503_p12 = por %p2502_p5, %p2501_p7 }
  0x46   : > { %p2497_p9 = pneg %p2496_p8 }
  0x48   : > { %p2504_p6 = pnand %p2503_p12, %p2497_p9 }
  0x4a   : > { %2507 = shalt.err (!%p2504_p6)
}
  0x4b   : > { %2116 = dma.hbm_to_vmem [thread:$0]  (!%p2758_p0), %s3133_s0, 32, %s138_s6, [#allocation3]  }
  0x4c   : > { %s2508_s21 = scalar_lea.hbm %s2765_s17, 240  ;;  %p3150_p10 = scmp.ne.s32.totalorder %s3144_s23, 0 }
  0x4d   : > { %p2509_p3 = scmp.ne.s32.totalorder %s2765_s17, %s2508_s21  ;;  %s2513_s26 = scalar_lea.hbm %s3135_s2, 480 }
  0x4e   : > { %p3151_p8 = pneg %p3150_p10  ;;  %p2514_p6 = scmp.lt.u32.totalorder %s2765_s17, %s3135_s2 }
  0x4f   : > { %p2515_p5 = scmp.lt.u32.totalorder %s2513_s26, %s2508_s21  ;;  %p2517_p9 = scmp.lt.u32.totalorder %s2508_s21, %s2765_s17 }
  0x50   : > { %p2511_p1 = pnand %p2509_p3, %p3151_p8 }
  0x51   : > { %p2516_p7 = por %p2515_p5, %p2514_p6 }
  0x52   : > { %p2512_p2 = pneg %p2511_p1 }
  0x53   : > { %p2518_p12 = por %p2517_p9, %p2516_p7 }
  0x55   : > { %p2519_p4 = pnand %p2518_p12, %p2512_p2 }
  0x57   : > { %2522 = shalt.err (!%p2519_p4)
}
  0x58   : > { %s2523_s6 = scalar_lea.vmem %s2767_s20, 240  ;;  %p3152_p11 = pmov %p3151_p8 }
  0x59   : > { %p2524_p0 = scmp.ne.s32.totalorder %s2767_s20, %s2523_s6  ;;  %s2615_s10 = smov [#allocation7]  }
  0x5a   : > { %s2528_s11 = sshll.u32 %s2615_s10, 4  ;;  %s2529_s11 = int_to_ptr.vmem [resolvable:$false] %s2528_s11 }
  0x5b   : > { %p2526_p13 = pnand %p2524_p0, %p3152_p11  ;;  %s2530_s7 = scalar_lea.vmem %s2529_s11, 480 }
  0x5c   : > { %p2531_p8 = scmp.lt.s32.totalorder %s2767_s20, %s2529_s11  ;;  %p2532_p1 = scmp.lt.s32.totalorder %s2530_s7, %s2523_s6 }
  0x5d   : > { %p2527_p3 = pneg %p2526_p13 }
  0x5e   : > { %p2533_p6 = por %p2532_p1, %p2531_p8 }
  0x60   : > { %p2534_p5 = pnand %p2533_p6, %p2527_p3 }
  0x62   : > { %2537 = shalt.err (!%p2534_p5)
}
  0x63   : > { %2123 = dma.hbm_to_vmem [thread:$0]  (!%p3150_p10), %s2765_s17, 240, %s2767_s20, %s2692_s30  }
  0x64   : > { %p3153_p2 = scmp.ne.s32.totalorder %s3148_s4, 0 }
  0x65   : > { %p3154_p7 = scmp.eq.s32.totalorder (!%p3153_p2), %s2721_s25, 0 }
  0x66   : > { %190 = sbr.rel (%p3153_p2) target bundleno = 542 (0x21e), region = 32 }
  0x6d   : > { %2583 = dma.done.wait (%p3154_p7), [#allocation3], 32   ;;  %p3155_p9 = pmov %p3154_p7 }
  0x6e   : > { %s196_s8 = sand.u32 1, %s2721_s25   ;;  %s2817_s18 = sand.u32 1, %s2600_s13  }
  0x6f   : > { %2585 = vsyncadd (%p3155_p9), [#allocation3], 4294967264  ;;  %s2101_s23 = smul.u32 1200, %s2817_s18  ;;  %s197_s21 = scalar_lea.sflag [#allocation6], %s196_s8 }
  0x70   : > { %p3156_p10 = scmp.ne.s32.totalorder %s3145_s28, 0 }
  0x71   : > { %s2820_s22 = scalar_lea.vmem [#allocation5], %s2101_s23 }
  0x72   : > { %2587 = dma.done.wait (%p3156_p10), %s197_s21, 19440  }
  0x73   : > { %2589 = vsyncadd (%p3156_p10), %s197_s21, 4294947856  ;;  %v2170_v0 = vld [vmem:[%s2820_s22 + $0x4] ss:$60 sps:$4 sm:$0xff]   ;;  %v2172_v1 = vld [vmem:[%s2820_s22 + $0xc] ss:$60 sps:$4 sm:$0xff]   ;;  %v243_v20 = vlaneseq  ;;  %vm1254_vm0 = vcmask 261120  }
  0x74   : > { %1258 = vmatprep.subr.bf16.mxu0 %v2170_v0  ;;  %v2174_v2 = vld [vmem:[%s2820_s22] ss:$60 sps:$4 sm:$0xff]   ;;  %v2175_v3 = vld [vmem:[%s2820_s22 + $0x8] ss:$60 sps:$4 sm:$0xff]   ;;  %1299 = vmatprep.subr.bf16.mxu1 %v2172_v1  ;;  %v2180_v6 = vld [vmem:[%s2820_s22 + $0x78] ss:$60 sps:$4 sm:$0xff]  }
  0x75   : > { %v2176_v4 = vld [vmem:[%s2820_s22 + $0x7c] ss:$60 sps:$4 sm:$0xff]   ;;  %1259 = vmatpush1.bf16.msra.mxu0 %v2174_v2  ;;  %1300 = vmatpush1.bf16.msra.mxu1 %v2175_v3  ;;  %v2178_v5 = vld [vmem:[%s2820_s22 + $0x84] ss:$60 sps:$4 sm:$0xff]   ;;  %v2182_v8 = vld [vmem:[%s2820_s22 + $0xf4] ss:$60 sps:$4 sm:$0xff]  }
  0x76   : > { %1260 = vmatprep.subr.bf16.mxu0 %v2176_v4  ;;  %v2181_v7 = vld [vmem:[%s2820_s22 + $0x80] ss:$60 sps:$4 sm:$0xff]   ;;  %1301 = vmatprep.subr.bf16.mxu1 %v2178_v5  ;;  %v2186_v10 = vld [vmem:[%s2820_s22 + $0xf0] ss:$60 sps:$4 sm:$0xff]   ;;  %v2187_v11 = vld [vmem:[%s2820_s22 + $0xf8] ss:$60 sps:$4 sm:$0xff]  }
  0x77   : > { %v2184_v9 = vld [vmem:[%s2820_s22 + $0xfc] ss:$60 sps:$4 sm:$0xff]   ;;  %v2188_v12 = vld [vmem:[%s2820_s22 + $0x16c] ss:$60 sps:$4 sm:$0xff]   ;;  %v2190_v13 = vld [vmem:[%s2820_s22 + $0x174] ss:$60 sps:$4 sm:$0xff]  }
  0x78   : > { %v2192_v14 = vld [vmem:[%s2820_s22 + $0x168] ss:$60 sps:$4 sm:$0xff]   ;;  %v2193_v15 = vld [vmem:[%s2820_s22 + $0x170] ss:$60 sps:$4 sm:$0xff]   ;;  %v2198_v18 = vld [vmem:[%s2820_s22 + $0x1e0] ss:$60 sps:$4 sm:$0xff]  }
  0x79   : > { %1261 = vmatpush1.bf16.msra.mxu0 %v2180_v6  ;;  %1302 = vmatpush1.bf16.msra.mxu1 %v2181_v7  ;;  %v2194_v16 = vld [vmem:[%s2820_s22 + $0x1e4] ss:$60 sps:$4 sm:$0xff]   ;;  %v2196_v17 = vld [vmem:[%s2820_s22 + $0x1ec] ss:$60 sps:$4 sm:$0xff]   ;;  %v2200_v21 = vld [vmem:[%s2820_s22 + $0x25c] ss:$60 sps:$4 sm:$0xff]  }
  0x7a   : > { %1262 = vmatprep.subr.bf16.mxu0 %v2182_v8  ;;  %1303 = vmatprep.subr.bf16.mxu1 %v2184_v9  ;;  %v2199_v19 = vld [vmem:[%s2820_s22 + $0x1e8] ss:$60 sps:$4 sm:$0xff]   ;;  %v2204_v23 = vld [vmem:[%s2820_s22 + $0x258] ss:$60 sps:$4 sm:$0xff]   ;;  %v2850_v24 = vshrl.u32 %v243_v20, 7  ;;  %s2102_s30 = smul.u32 15, %s2817_s18 }
  0x7b   : > { %v2202_v22 = vld [vmem:[%s2820_s22 + $0x264] ss:$60 sps:$4 sm:$0xff]   ;;  %v2206_v26 = vld [vmem:[%s2820_s22 + $0x2d4] ss:$60 sps:$4 sm:$0xff]   ;;  %v2208_v27 = vld [vmem:[%s2820_s22 + $0x2dc] ss:$60 sps:$4 sm:$0xff]  }
  0x7c   : > { %v2205_v25 = vld [vmem:[%s2820_s22 + $0x260] ss:$60 sps:$4 sm:$0xff]   ;;  %v2210_v28 = vld [vmem:[%s2820_s22 + $0x2d0] ss:$60 sps:$4 sm:$0xff]   ;;  %v2211_v29 = vld [vmem:[%s2820_s22 + $0x2d8] ss:$60 sps:$4 sm:$0xff]  }
  0x7d   : > { %1263 = vmatpush1.bf16.msra.mxu0 %v2186_v10  ;;  %1304 = vmatpush1.bf16.msra.mxu1 %v2187_v11  ;;  %v2858_v30 = vsub.s32 1, %v2850_v24  ;;  %v2212_v31 = vld [vmem:[%s2820_s22 + $0x34c] ss:$60 sps:$4 sm:$0xff]   ;;  %v2214_v32 = vld [vmem:[%s2820_s22 + $0x354] ss:$60 sps:$4 sm:$0xff]   ;;  %v2875_v41 = vsub.s32 0, %v2850_v24 }
  0x7e   : > { %1264 = vmatprep.subr.bf16.mxu0 %v2188_v12  ;;  %1305 = vmatprep.subr.bf16.mxu1 %v2190_v13  ;;  %v241_v33 = vld [vmem:[#allocation2] sm:$0x3]  ;;  %v2216_v34 = vld [vmem:[%s2820_s22 + $0x348] ss:$60 sps:$4 sm:$0xff]   ;;  %v2228_v45 = vld [vmem:[%s2820_s22 + $0x438] ss:$60 sps:$4 sm:$0xff]  }
  0x7f   : > { %v250_v35 = vrot.slane %v241_v33, %v2858_v30  ;;  %v2217_v36 = vld [vmem:[%s2820_s22 + $0x350] ss:$60 sps:$4 sm:$0xff]   ;;  %v2218_v37 = vld [vmem:[%s2820_s22 + $0x3c4] ss:$60 sps:$4 sm:$0xff]   ;;  %v2224_v43 = vld [vmem:[%s2820_s22 + $0x43c] ss:$60 sps:$4 sm:$0xff]   ;;  %v246_v46 = vrot.slane %v241_v33, %v2875_v41 }
  0x80   : > { %v2220_v38 = vld [vmem:[%s2820_s22 + $0x3cc] ss:$60 sps:$4 sm:$0xff]   ;;  %v2222_v40 = vld [vmem:[%s2820_s22 + $0x3c0] ss:$60 sps:$4 sm:$0xff]   ;;  %v2232_v48 = vld [vmem:[%s2820_s22 + $0x14] ss:$60 sps:$4 sm:$0xff]  }
  0x81   : > { %1265 = vmatpush1.bf16.msra.mxu0 %v2192_v14  ;;  %1306 = vmatpush1.bf16.msra.mxu1 %v2193_v15  ;;  %v2867_v39 = vpack.c.bf16 %v250_v35, %v250_v35  ;;  %v2223_v42 = vld [vmem:[%s2820_s22 + $0x3c8] ss:$60 sps:$4 sm:$0xff]   ;;  %v2229_v47 = vld [vmem:[%s2820_s22 + $0x440] ss:$60 sps:$4 sm:$0xff]   ;;  %v2885_v50 = vpack.c.bf16 %v246_v46, %v246_v46  ;;  %v2230_v51 = vld [vmem:[%s2820_s22 + $0x10] ss:$60 sps:$4 sm:$0xff]  }
  0x82   : > { %1266 = vmatprep.subr.bf16.mxu0 %v2194_v16  ;;  %1307 = vmatprep.subr.bf16.mxu1 %v2196_v17  ;;  %v2226_v44 = vld [vmem:[%s2820_s22 + $0x444] ss:$60 sps:$4 sm:$0xff]   ;;  %v2235_v49 = vld [vmem:[%s2820_s22 + $0x1c] ss:$60 sps:$4 sm:$0xff]   ;;  %v2238_v53 = vld [vmem:[%s2820_s22 + $0x8c] ss:$60 sps:$4 sm:$0xff]  }
  0x83   : > { %2070 = vmatprep.mubr.msk.bf16.mxu0 %vm1254_vm0, %v2867_v39  ;;  %2071 = vmatprep.mubr.msk.bf16.mxu1 %vm1254_vm0, %v2867_v39  ;;  %v2233_v52 = vld [vmem:[%s2820_s22 + $0x18] ss:$60 sps:$4 sm:$0xff]   ;;  %v2236_v55 = vld [vmem:[%s2820_s22 + $0x88] ss:$60 sps:$4 sm:$0xff]   ;;  %v2239_v56 = vld [vmem:[%s2820_s22 + $0x90] ss:$60 sps:$4 sm:$0xff]  }
  0x84   : > { %v2241_v54 = vld [vmem:[%s2820_s22 + $0x94] ss:$60 sps:$4 sm:$0xff]   ;;  %v2244_v57 = vld [vmem:[%s2820_s22 + $0x104] ss:$60 sps:$4 sm:$0xff]   ;;  %v2247_v58 = vld [vmem:[%s2820_s22 + $0x10c] ss:$60 sps:$4 sm:$0xff]  }
  0x85   : > { %1267 = vmatpush1.bf16.msra.mxu0 %v2198_v18  ;;  %1308 = vmatpush1.bf16.msra.mxu1 %v2199_v19  ;;  %v2242_v59 = vld [vmem:[%s2820_s22 + $0x100] ss:$60 sps:$4 sm:$0xff]   ;;  %v2245_v60 = vld [vmem:[%s2820_s22 + $0x108] ss:$60 sps:$4 sm:$0xff]   ;;  %v2248_v63 = vld [vmem:[%s2820_s22 + $0x178] ss:$60 sps:$4 sm:$0xff]  }
  0x86   : > { %1268 = vmatprep.subr.bf16.mxu0 %v2200_v21  ;;  %1309 = vmatprep.subr.bf16.mxu1 %v2202_v22  ;;  %v2250_v61 = vld [vmem:[%s2820_s22 + $0x17c] ss:$60 sps:$4 sm:$0xff]   ;;  %v2253_v62 = vld [vmem:[%s2820_s22 + $0x184] ss:$60 sps:$4 sm:$0xff]   ;;  %v2256_v1 = vld [vmem:[%s2820_s22 + $0x1f4] ss:$60 sps:$4 sm:$0xff]  }
  0x87   : > { %v2251_v0 = vld [vmem:[%s2820_s22 + $0x180] ss:$60 sps:$4 sm:$0xff]   ;;  %v2254_v3 = vld [vmem:[%s2820_s22 + $0x1f0] ss:$60 sps:$4 sm:$0xff]   ;;  %v2257_v4 = vld [vmem:[%s2820_s22 + $0x1f8] ss:$60 sps:$4 sm:$0xff]  }
  0x88   : > { %v2259_v2 = vld [vmem:[%s2820_s22 + $0x1fc] ss:$60 sps:$4 sm:$0xff]   ;;  %v2262_v5 = vld [vmem:[%s2820_s22 + $0x26c] ss:$60 sps:$4 sm:$0xff]   ;;  %v2265_v6 = vld [vmem:[%s2820_s22 + $0x274] ss:$60 sps:$4 sm:$0xff]  }
  0x89   : > { %1269 = vmatpush1.bf16.msra.mxu0 %v2204_v23  ;;  %1310 = vmatpush1.bf16.msra.mxu1 %v2205_v25  ;;  %v2260_v7 = vld [vmem:[%s2820_s22 + $0x268] ss:$60 sps:$4 sm:$0xff]   ;;  %v2263_v8 = vld [vmem:[%s2820_s22 + $0x270] ss:$60 sps:$4 sm:$0xff]   ;;  %v2266_v11 = vld [vmem:[%s2820_s22 + $0x2e0] ss:$60 sps:$4 sm:$0xff]  }
  0x8a   : > { %1270 = vmatprep.subr.bf16.mxu0 %v2206_v26  ;;  %1311 = vmatprep.subr.bf16.mxu1 %v2208_v27  ;;  %v2268_v9 = vld [vmem:[%s2820_s22 + $0x2e4] ss:$60 sps:$4 sm:$0xff]   ;;  %v2271_v10 = vld [vmem:[%s2820_s22 + $0x2ec] ss:$60 sps:$4 sm:$0xff]   ;;  %v2274_v13 = vld [vmem:[%s2820_s22 + $0x35c] ss:$60 sps:$4 sm:$0xff]  }
  0x8b   : > { %v2269_v12 = vld [vmem:[%s2820_s22 + $0x2e8] ss:$60 sps:$4 sm:$0xff]   ;;  %v2272_v15 = vld [vmem:[%s2820_s22 + $0x358] ss:$60 sps:$4 sm:$0xff]   ;;  %v2275_v16 = vld [vmem:[%s2820_s22 + $0x360] ss:$60 sps:$4 sm:$0xff]  }
  0x8c   : > { %v2277_v14 = vld [vmem:[%s2820_s22 + $0x364] ss:$60 sps:$4 sm:$0xff]   ;;  %v2280_v17 = vld [vmem:[%s2820_s22 + $0x3d4] ss:$60 sps:$4 sm:$0xff]   ;;  %v2283_v18 = vld [vmem:[%s2820_s22 + $0x3dc] ss:$60 sps:$4 sm:$0xff]  }
  0x8d   : > { %1271 = vmatpush1.bf16.msra.mxu0 %v2210_v28  ;;  %1312 = vmatpush1.bf16.msra.mxu1 %v2211_v29  ;;  %v2278_v19 = vld [vmem:[%s2820_s22 + $0x3d0] ss:$60 sps:$4 sm:$0xff]   ;;  %v2281_v21 = vld [vmem:[%s2820_s22 + $0x3d8] ss:$60 sps:$4 sm:$0xff]   ;;  %v2284_v25 = vld [vmem:[%s2820_s22 + $0x448] ss:$60 sps:$4 sm:$0xff]  }
  0x8e   : > { %1272 = vmatprep.subr.bf16.mxu0 %v2212_v31  ;;  %1313 = vmatprep.subr.bf16.mxu1 %v2214_v32  ;;  %v2286_v22 = vld [vmem:[%s2820_s22 + $0x44c] ss:$60 sps:$4 sm:$0xff]   ;;  %v2289_v23 = vld [vmem:[%s2820_s22 + $0x454] ss:$60 sps:$4 sm:$0xff]   ;;  %v2292_v27 = vld [vmem:[%s2820_s22 + $0x24] ss:$60 sps:$4 sm:$0xff]  }
  0x8f   : > { %v2287_v26 = vld [vmem:[%s2820_s22 + $0x450] ss:$60 sps:$4 sm:$0xff]   ;;  %v2290_v29 = vld [vmem:[%s2820_s22 + $0x20] ss:$60 sps:$4 sm:$0xff]   ;;  %v2293_v31 = vld [vmem:[%s2820_s22 + $0x28] ss:$60 sps:$4 sm:$0xff]  }
  0x90   : > { %v2295_v28 = vld [vmem:[%s2820_s22 + $0x2c] ss:$60 sps:$4 sm:$0xff]   ;;  %v2298_v32 = vld [vmem:[%s2820_s22 + $0x9c] ss:$60 sps:$4 sm:$0xff]   ;;  %v2301_v33 = vld [vmem:[%s2820_s22 + $0xa4] ss:$60 sps:$4 sm:$0xff]  }
  0x91   : > { %1273 = vmatpush1.bf16.msra.mxu0 %v2216_v34  ;;  %1314 = vmatpush1.bf16.msra.mxu1 %v2217_v36  ;;  %v2296_v34 = vld [vmem:[%s2820_s22 + $0x98] ss:$60 sps:$4 sm:$0xff]   ;;  %v2299_v35 = vld [vmem:[%s2820_s22 + $0xa0] ss:$60 sps:$4 sm:$0xff]   ;;  %s3029_s28 = scalar_lea.vmem [#allocation7], %s2102_s30  ;;  %s3067_s4 = scalar_lea.vmem [#allocation8], %s2102_s30 }
  0x92   : > { %1274 = vmatprep.subr.bf16.mxu0 %v2218_v37  ;;  %1315 = vmatprep.subr.bf16.mxu1 %v2220_v38  ;;  %v2304_v36 = vld [vmem:[%s2820_s22 + $0x114] ss:$60 sps:$4 sm:$0xff]   ;;  %v2307_v37 = vld [vmem:[%s2820_s22 + $0x11c] ss:$60 sps:$4 sm:$0xff]   ;;  %v2316_v46 = vld [vmem:[%s2820_s22 + $0x204] ss:$60 sps:$4 sm:$0xff]  }
  0x93   : > { %v2302_v38 = vld [vmem:[%s2820_s22 + $0x110] ss:$60 sps:$4 sm:$0xff]   ;;  %s2098_s17 = smul.u32 240, %s2721_s25  ;;  %s1810_s20 = sshll.u32 %s3067_s4, 4  ;;  %vm1792_vm1 = vcmp.lt.s32.totalorder %v243_v20, 896  ;;  %s3090_s20 = int_to_ptr.vmem [resolvable:$true] %s1810_s20 }
  0x94   : > { %s1796_s25 = scalar_lea.sflag [#allocation4], %s2817_s18  ;;  %s2538_s5 = scalar_lea.vmem %s3090_s20, 240 }
  0x95   : > { %1275 = vmatpush1.bf16.msra.mxu0 %v2222_v40  ;;  %1316 = vmatpush1.bf16.msra.mxu1 %v2223_v42  ;;  %v2305_v40 = vld [vmem:[%s2820_s22 + $0x118] ss:$60 sps:$4 sm:$0xff]   ;;  %v2310_v42 = vld [vmem:[%s2820_s22 + $0x18c] ss:$60 sps:$4 sm:$0xff]   ;;  %s3088_s9 = scalar_lea.hbm %s3136_s3, %s2098_s17  ;;  %p2539_p12 = scmp.ne.s32.totalorder %s3090_s20, %s2538_s5 }
  0x96   : > { %1276 = vmatprep.subr.bf16.mxu0 %v2224_v43  ;;  %1317 = vmatprep.subr.bf16.mxu1 %v2226_v44  ;;  %v2313_v43 = vld [vmem:[%s2820_s22 + $0x194] ss:$60 sps:$4 sm:$0xff]   ;;  %v2308_v44 = vld [vmem:[%s2820_s22 + $0x188] ss:$60 sps:$4 sm:$0xff]   ;;  %p3157_p4 = scmp.ne.s32.totalorder %s3146_s27, 0  ;;  %s2618_s6 = smov [#allocation8]  }
  0x97   : > { %s2542_s10 = sshll.u32 %s2618_s6, 4  ;;  %s2543_s10 = int_to_ptr.vmem [resolvable:$false] %s2542_s10 }
  0x98   : > { %p2540_p0 = pnand %p2539_p12, %p3157_p4  ;;  %s2544_s11 = scalar_lea.vmem %s2543_s10, 480 }
  0x99   : > { %1277 = vmatpush1.bf16.msra.mxu0 %v2228_v45  ;;  %1318 = vmatpush1.bf16.msra.mxu1 %v2229_v47  ;;  %v2311_v45 = vld [vmem:[%s2820_s22 + $0x190] ss:$60 sps:$4 sm:$0xff]   ;;  %p2545_p13 = scmp.lt.s32.totalorder %s3090_s20, %s2543_s10  ;;  %p2546_p3 = scmp.lt.s32.totalorder %s2544_s11, %s2538_s5 }
  0x9a   : > { %1340 = vmatprep.subr.bf16.mxu0 %v2232_v48  ;;  %1381 = vmatprep.subr.bf16.mxu1 %v2235_v49  ;;  %v2319_v47 = vld [vmem:[%s2820_s22 + $0x20c] ss:$60 sps:$4 sm:$0xff]   ;;  %v2314_v48 = vld [vmem:[%s2820_s22 + $0x200] ss:$60 sps:$4 sm:$0xff]   ;;  %p2541_p11 = pneg %p2540_p0 }
  0x9b   : > { %v2317_v49 = vld [vmem:[%s2820_s22 + $0x208] ss:$60 sps:$4 sm:$0xff]   ;;  %p2547_p8 = por %p2546_p3, %p2545_p13 }
  0x9c   : > { %1291 = vmatmul.mubr.bf16.vlgmr.msra.gmra.mrb[0].mxu0 %v2885_v50  ;;  %1332 = vmatmul.mubr.bf16.vlgmr.msra.gmra.mrb[0].mxu1 %v2885_v50 }
  0x9d   : > { %1341 = vmatpush1.bf16.msra.mxu0 %v2230_v51  ;;  %1382 = vmatpush1.bf16.msra.mxu1 %v2233_v52  ;;  %v2322_v51 = vld [vmem:[%s2820_s22 + $0x27c] ss:$60 sps:$4 sm:$0xff]   ;;  %v2325_v52 = vld [vmem:[%s2820_s22 + $0x284] ss:$60 sps:$4 sm:$0xff]   ;;  %p2548_p1 = pnand %p2547_p8, %p2541_p11 }
  0x9e   : > { %1342 = vmatprep.subr.bf16.mxu0 %v2238_v53  ;;  %1383 = vmatprep.subr.bf16.mxu1 %v2241_v54  ;;  %v2320_v53 = vld [vmem:[%s2820_s22 + $0x278] ss:$60 sps:$4 sm:$0xff]   ;;  %v2323_v54 = vld [vmem:[%s2820_s22 + $0x280] ss:$60 sps:$4 sm:$0xff]  }
  0x9f   : > { %2072 = vmatprep.mubr.msk.bf16.mxu0 %vm1254_vm0, %v2867_v39  ;;  %2073 = vmatprep.mubr.msk.bf16.mxu1 %vm1254_vm0, %v2867_v39 }
  0xa1   : > { %1343 = vmatpush1.bf16.msra.mxu0 %v2236_v55  ;;  %1384 = vmatpush1.bf16.msra.mxu1 %v2239_v56  ;;  %v2328_v55 = vld [vmem:[%s2820_s22 + $0x2f4] ss:$60 sps:$4 sm:$0xff]   ;;  %v2331_v56 = vld [vmem:[%s2820_s22 + $0x2fc] ss:$60 sps:$4 sm:$0xff]  }
  0xa2   : > { %1344 = vmatprep.subr.bf16.mxu0 %v2244_v57  ;;  %1385 = vmatprep.subr.bf16.mxu1 %v2247_v58  ;;  %v2326_v57 = vld [vmem:[%s2820_s22 + $0x2f0] ss:$60 sps:$4 sm:$0xff]   ;;  %v2329_v58 = vld [vmem:[%s2820_s22 + $0x2f8] ss:$60 sps:$4 sm:$0xff]  }
  0xa5   : > { %1345 = vmatpush1.bf16.msra.mxu0 %v2242_v59  ;;  %1386 = vmatpush1.bf16.msra.mxu1 %v2245_v60  ;;  %v2334_v59 = vld [vmem:[%s2820_s22 + $0x36c] ss:$60 sps:$4 sm:$0xff]   ;;  %v2337_v60 = vld [vmem:[%s2820_s22 + $0x374] ss:$60 sps:$4 sm:$0xff]  }
  0xa6   : > { %1346 = vmatprep.subr.bf16.mxu0 %v2250_v61  ;;  %1387 = vmatprep.subr.bf16.mxu1 %v2253_v62  ;;  %v2332_v61 = vld [vmem:[%s2820_s22 + $0x368] ss:$60 sps:$4 sm:$0xff]   ;;  %v2335_v62 = vld [vmem:[%s2820_s22 + $0x370] ss:$60 sps:$4 sm:$0xff]  }
  0xa9   : > { %1347 = vmatpush1.bf16.msra.mxu0 %v2248_v63  ;;  %1388 = vmatpush1.bf16.msra.mxu1 %v2251_v0  ;;  %v2340_v63 = vld [vmem:[%s2820_s22 + $0x3e4] ss:$60 sps:$4 sm:$0xff]   ;;  %v2343_v0 = vld [vmem:[%s2820_s22 + $0x3ec] ss:$60 sps:$4 sm:$0xff]  }
  0xaa   : > { %1348 = vmatprep.subr.bf16.mxu0 %v2256_v1  ;;  %1389 = vmatprep.subr.bf16.mxu1 %v2259_v2  ;;  %v2338_v1 = vld [vmem:[%s2820_s22 + $0x3e0] ss:$60 sps:$4 sm:$0xff]   ;;  %v2341_v2 = vld [vmem:[%s2820_s22 + $0x3e8] ss:$60 sps:$4 sm:$0xff]  }
  0xad   : > { %1349 = vmatpush1.bf16.msra.mxu0 %v2254_v3  ;;  %1390 = vmatpush1.bf16.msra.mxu1 %v2257_v4  ;;  %v2346_v3 = vld [vmem:[%s2820_s22 + $0x45c] ss:$60 sps:$4 sm:$0xff]   ;;  %v2349_v4 = vld [vmem:[%s2820_s22 + $0x464] ss:$60 sps:$4 sm:$0xff]  }
  0xae   : > { %1350 = vmatprep.subr.bf16.mxu0 %v2262_v5  ;;  %1391 = vmatprep.subr.bf16.mxu1 %v2265_v6  ;;  %v2344_v5 = vld [vmem:[%s2820_s22 + $0x458] ss:$60 sps:$4 sm:$0xff]   ;;  %v2347_v6 = vld [vmem:[%s2820_s22 + $0x460] ss:$60 sps:$4 sm:$0xff]  }
  0xb1   : > { %1351 = vmatpush1.bf16.msra.mxu0 %v2260_v7  ;;  %1392 = vmatpush1.bf16.msra.mxu1 %v2263_v8  ;;  %v2352_v7 = vld [vmem:[%s2820_s22 + $0x34] ss:$60 sps:$4 sm:$0xff]  }
  0xb2   : > { %1352 = vmatprep.subr.bf16.mxu0 %v2268_v9  ;;  %1393 = vmatprep.subr.bf16.mxu1 %v2271_v10  ;;  %v2350_v8 = vld [vmem:[%s2820_s22 + $0x30] ss:$60 sps:$4 sm:$0xff]   ;;  %v2353_v9 = vld [vmem:[%s2820_s22 + $0x38] ss:$60 sps:$4 sm:$0xff]   ;;  %v2616_v10 = vmov 0  }
  0xb5   : > { %1353 = vmatpush1.bf16.msra.mxu0 %v2266_v11  ;;  %1394 = vmatpush1.bf16.msra.mxu1 %v2269_v12  ;;  %v2356_v11 = vld [vmem:[%s2820_s22 + $0xac] ss:$60 sps:$4 sm:$0xff]  }
  0xb6   : > { %1354 = vmatprep.subr.bf16.mxu0 %v2274_v13  ;;  %1395 = vmatprep.subr.bf16.mxu1 %v2277_v14  ;;  %v2354_v12 = vld [vmem:[%s2820_s22 + $0xa8] ss:$60 sps:$4 sm:$0xff]   ;;  %v2357_v13 = vld [vmem:[%s2820_s22 + $0xb0] ss:$60 sps:$4 sm:$0xff]  }
  0xb7   : > { %v2360_v14 = vld [vmem:[%s2820_s22 + $0x124] ss:$60 sps:$4 sm:$0xff]  }
  0xb9   : > { %1355 = vmatpush1.bf16.msra.mxu0 %v2272_v15  ;;  %1396 = vmatpush1.bf16.msra.mxu1 %v2275_v16  ;;  %v2358_v15 = vld [vmem:[%s2820_s22 + $0x120] ss:$60 sps:$4 sm:$0xff]   ;;  %v2361_v16 = vld [vmem:[%s2820_s22 + $0x128] ss:$60 sps:$4 sm:$0xff]  }
  0xba   : > { %1356 = vmatprep.subr.bf16.mxu0 %v2280_v17  ;;  %1397 = vmatprep.subr.bf16.mxu1 %v2283_v18  ;;  %v2364_v17 = vld [vmem:[%s2820_s22 + $0x19c] ss:$60 sps:$4 sm:$0xff]  }
  0xbb   : > { %v2362_v18 = vld [vmem:[%s2820_s22 + $0x198] ss:$60 sps:$4 sm:$0xff]  }
  0xbd   : > { %1357 = vmatpush1.bf16.msra.mxu0 %v2278_v19  ;;  %1398 = vmatpush1.bf16.msra.mxu1 %v2281_v21  ;;  %v2365_v19 = vld [vmem:[%s2820_s22 + $0x1a0] ss:$60 sps:$4 sm:$0xff]   ;;  %v2366_v21 = vld [vmem:[%s2820_s22 + $0x210] ss:$60 sps:$4 sm:$0xff]  }
  0xbe   : > { %1358 = vmatprep.subr.bf16.mxu0 %v2286_v22  ;;  %1399 = vmatprep.subr.bf16.mxu1 %v2289_v23  ;;  %v2369_v22 = vld [vmem:[%s2820_s22 + $0x218] ss:$60 sps:$4 sm:$0xff]   ;;  %v2372_v23 = vld [vmem:[%s2820_s22 + $0x28c] ss:$60 sps:$4 sm:$0xff]  }
  0xc1   : > { %1359 = vmatpush1.bf16.msra.mxu0 %v2284_v25  ;;  %1400 = vmatpush1.bf16.msra.mxu1 %v2287_v26  ;;  %v2370_v25 = vld [vmem:[%s2820_s22 + $0x288] ss:$60 sps:$4 sm:$0xff]   ;;  %v2373_v26 = vld [vmem:[%s2820_s22 + $0x290] ss:$60 sps:$4 sm:$0xff]  }
  0xc2   : > { %1422 = vmatprep.subr.bf16.mxu0 %v2292_v27  ;;  %1463 = vmatprep.subr.bf16.mxu1 %v2295_v28  ;;  %v2376_v27 = vld [vmem:[%s2820_s22 + $0x304] ss:$60 sps:$4 sm:$0xff]  }
  0xc3   : > { %v2374_v28 = vld [vmem:[%s2820_s22 + $0x300] ss:$60 sps:$4 sm:$0xff]  }
  0xc4   : > { %1373 = vmatmul.mubr.bf16.vlgmr.msra.gmra.mrb[4].mxu0 %v2885_v50  ;;  %1414 = vmatmul.mubr.bf16.vlgmr.msra.gmra.mrb[4].mxu1 %v2885_v50 }
  0xc5   : > { %1423 = vmatpush1.bf16.msra.mxu0 %v2290_v29  ;;  %1464 = vmatpush1.bf16.msra.mxu1 %v2293_v31  ;;  %v2377_v29 = vld [vmem:[%s2820_s22 + $0x308] ss:$60 sps:$4 sm:$0xff]   ;;  %v2380_v31 = vld [vmem:[%s2820_s22 + $0x37c] ss:$60 sps:$4 sm:$0xff]  }
  0xc6   : > { %1424 = vmatprep.subr.bf16.mxu0 %v2298_v32  ;;  %1465 = vmatprep.subr.bf16.mxu1 %v2301_v33  ;;  %v2378_v32 = vld [vmem:[%s2820_s22 + $0x378] ss:$60 sps:$4 sm:$0xff]   ;;  %v2381_v33 = vld [vmem:[%s2820_s22 + $0x380] ss:$60 sps:$4 sm:$0xff]  }
  0xc7   : > { %2074 = vmatprep.mubr.msk.bf16.mxu0 %vm1254_vm0, %v2867_v39  ;;  %2075 = vmatprep.mubr.msk.bf16.mxu1 %vm1254_vm0, %v2867_v39 }
  0xc9   : > { %1425 = vmatpush1.bf16.msra.mxu0 %v2296_v34  ;;  %1466 = vmatpush1.bf16.msra.mxu1 %v2299_v35  ;;  %v2384_v34 = vld [vmem:[%s2820_s22 + $0x3f4] ss:$60 sps:$4 sm:$0xff]  }
  0xca   : > { %1426 = vmatprep.subr.bf16.mxu0 %v2304_v36  ;;  %1467 = vmatprep.subr.bf16.mxu1 %v2307_v37  ;;  %v2382_v35 = vld [vmem:[%s2820_s22 + $0x3f0] ss:$60 sps:$4 sm:$0xff]   ;;  %v2385_v36 = vld [vmem:[%s2820_s22 + $0x3f8] ss:$60 sps:$4 sm:$0xff]  }
  0xcb   : > { %v2388_v37 = vld [vmem:[%s2820_s22 + $0x46c] ss:$60 sps:$4 sm:$0xff]  }
  0xcd   : > { %1427 = vmatpush1.bf16.msra.mxu0 %v2302_v38  ;;  %1468 = vmatpush1.bf16.msra.mxu1 %v2305_v40  ;;  %v2386_v38 = vld [vmem:[%s2820_s22 + $0x468] ss:$60 sps:$4 sm:$0xff]   ;;  %v2389_v40 = vld [vmem:[%s2820_s22 + $0x470] ss:$60 sps:$4 sm:$0xff]  }
  0xce   : > { %1428 = vmatprep.subr.bf16.mxu0 %v2310_v42  ;;  %1469 = vmatprep.subr.bf16.mxu1 %v2313_v43  ;;  %v1189_v42 = vsub.s32 2, %v2850_v24  ;;  %v415_v43 = vld [vmem:[%s3029_s28] sm:$0xff] }
  0xd1   : > { %1429 = vmatpush1.bf16.msra.mxu0 %v2308_v44  ;;  %1470 = vmatpush1.bf16.msra.mxu1 %v2311_v45  ;;  %v1193_v44 = vsub.s32 3, %v2850_v24  ;;  %v1182_v45 = vrot.slane %v415_v43, %v2875_v41 }
  0xd2   : > { %1430 = vmatprep.subr.bf16.mxu0 %v2316_v46  ;;  %1471 = vmatprep.subr.bf16.mxu1 %v2319_v47  ;;  %v1190_v46 = vrot.slane %v415_v43, %v1189_v42  ;;  %v1186_v47 = vrot.slane %v415_v43, %v2858_v30 }
  0xd5   : > { %1431 = vmatpush1.bf16.msra.mxu0 %v2314_v48  ;;  %1472 = vmatpush1.bf16.msra.mxu1 %v2317_v49 }
  0xd6   : > { %1432 = vmatprep.subr.bf16.mxu0 %v2322_v51  ;;  %1473 = vmatprep.subr.bf16.mxu1 %v2325_v52 }
  0xd9   : > { %1433 = vmatpush1.bf16.msra.mxu0 %v2320_v53  ;;  %1474 = vmatpush1.bf16.msra.mxu1 %v2323_v54 }
  0xda   : > { %1434 = vmatprep.subr.bf16.mxu0 %v2328_v55  ;;  %1475 = vmatprep.subr.bf16.mxu1 %v2331_v56 }
  0xdd   : > { %1435 = vmatpush1.bf16.msra.mxu0 %v2326_v57  ;;  %1476 = vmatpush1.bf16.msra.mxu1 %v2329_v58 }
  0xde   : > { %1436 = vmatprep.subr.bf16.mxu0 %v2334_v59  ;;  %1477 = vmatprep.subr.bf16.mxu1 %v2337_v60 }
  0xe1   : > { %1437 = vmatpush1.bf16.msra.mxu0 %v2332_v61  ;;  %1478 = vmatpush1.bf16.msra.mxu1 %v2335_v62 }
  0xe2   : > { %1438 = vmatprep.subr.bf16.mxu0 %v2340_v63  ;;  %1479 = vmatprep.subr.bf16.mxu1 %v2343_v0 }
  0xe5   : > { %1439 = vmatpush1.bf16.msra.mxu0 %v2338_v1  ;;  %1480 = vmatpush1.bf16.msra.mxu1 %v2341_v2 }
  0xe6   : > { %1440 = vmatprep.subr.bf16.mxu0 %v2346_v3  ;;  %1481 = vmatprep.subr.bf16.mxu1 %v2349_v4 }
  0xe9   : > { %1441 = vmatpush1.bf16.msra.mxu0 %v2344_v5  ;;  %1482 = vmatpush1.bf16.msra.mxu1 %v2347_v6 }
  0xea   : > { %1504 = vmatprep.subr.bf16.mxu0 %v2352_v7  ;;  %1545 = vmatprep.subr.bf16.mxu1 %v2616_v10 }
  0xec   : > { %1455 = vmatmul.mubr.bf16.vlgmr.msra.gmra.mrb[8].mxu0 %v2885_v50  ;;  %1496 = vmatmul.mubr.bf16.vlgmr.msra.gmra.mrb[8].mxu1 %v2885_v50 }
  0xed   : > { %1505 = vmatpush1.bf16.msra.mxu0 %v2350_v8  ;;  %1546 = vmatpush1.bf16.msra.mxu1 %v2353_v9  ;;  %v2617_v9 = vmov 1966171168  }
  0xee   : > { %1506 = vmatprep.subr.bf16.mxu0 %v2356_v11  ;;  %1547 = vmatprep.subr.bf16.mxu1 %v2616_v10 }
  0xef   : > { %2076 = vmatprep.mubr.msk.bf16.mxu0 %vm1254_vm0, %v2867_v39  ;;  %2077 = vmatprep.mubr.msk.bf16.mxu1 %vm1254_vm0, %v2867_v39  ;;  %v2368_v39 = vld [vmem:[%s2820_s22 + $0x214] ss:$60 sps:$4 sm:$0xff]  }
  0xf1   : > { %1507 = vmatpush1.bf16.msra.mxu0 %v2354_v12  ;;  %1548 = vmatpush1.bf16.msra.mxu1 %v2357_v13 }
  0xf2   : > { %1508 = vmatprep.subr.bf16.mxu0 %v2360_v14  ;;  %1549 = vmatprep.subr.bf16.mxu1 %v2616_v10 }
  0xf5   : > { %1509 = vmatpush1.bf16.msra.mxu0 %v2358_v15  ;;  %1550 = vmatpush1.bf16.msra.mxu1 %v2361_v16 }
  0xf6   : > { %1510 = vmatprep.subr.bf16.mxu0 %v2364_v17  ;;  %1551 = vmatprep.subr.bf16.mxu1 %v2616_v10 }
  0xf9   : > { %1511 = vmatpush1.bf16.msra.mxu0 %v2362_v18  ;;  %1552 = vmatpush1.bf16.msra.mxu1 %v2365_v19 }
  0xfa   : > { %1512 = vmatprep.subr.bf16.mxu0 %v2368_v39  ;;  %1553 = vmatprep.subr.bf16.mxu1 %v2616_v10  ;;  %v1197_v39 = vsub.s32 4, %v2850_v24 }
  0xfd   : > { %1513 = vmatpush1.bf16.msra.mxu0 %v2366_v21  ;;  %1554 = vmatpush1.bf16.msra.mxu1 %v2369_v22  ;;  %v1205_v21 = vsub.s32 6, %v2850_v24 }
  0xfe   : > { %1514 = vmatprep.subr.bf16.mxu0 %v2372_v23  ;;  %1555 = vmatprep.subr.bf16.mxu1 %v2616_v10  ;;  %v1201_v23 = vsub.s32 5, %v2850_v24 }
 0x101   : > { %1515 = vmatpush1.bf16.msra.mxu0 %v2370_v25  ;;  %1556 = vmatpush1.bf16.msra.mxu1 %v2373_v26  ;;  %v1209_v25 = vsub.s32 7, %v2850_v24 }
 0x102   : > { %1516 = vmatprep.subr.bf16.mxu0 %v2376_v27  ;;  %1557 = vmatprep.subr.bf16.mxu1 %v2616_v10  ;;  %v1198_v27 = vrot.slane %v415_v43, %v1197_v39 }
 0x105   : > { %1517 = vmatpush1.bf16.msra.mxu0 %v2374_v28  ;;  %1558 = vmatpush1.bf16.msra.mxu1 %v2377_v29  ;;  %v1206_v28 = vrot.slane %v415_v43, %v1205_v21  ;;  %v1202_v29 = vrot.slane %v415_v43, %v1201_v23 }
 0x106   : > { %1518 = vmatprep.subr.bf16.mxu0 %v2380_v31  ;;  %1559 = vmatprep.subr.bf16.mxu1 %v2616_v10  ;;  %v1210_v31 = vrot.slane %v415_v43, %v1209_v25 }
 0x109   : > { %1519 = vmatpush1.bf16.msra.mxu0 %v2378_v32  ;;  %1560 = vmatpush1.bf16.msra.mxu1 %v2381_v33 }
 0x10a   : > { %1520 = vmatprep.subr.bf16.mxu0 %v2384_v34  ;;  %1561 = vmatprep.subr.bf16.mxu1 %v2616_v10 }
 0x10d   : > { %1521 = vmatpush1.bf16.msra.mxu0 %v2382_v35  ;;  %1562 = vmatpush1.bf16.msra.mxu1 %v2385_v36 }
 0x10e   : > { %1522 = vmatprep.subr.bf16.mxu0 %v2388_v37  ;;  %1563 = vmatprep.subr.bf16.mxu1 %v2616_v10  ;;  %v1695_v10 = vunpack.c.l.s4 %v2617_v9 }
 0x110   : > { %v1696_v11 = vunpack.c.0.s8 %v1695_v10 }
 0x111   : > { %1523 = vmatpush1.bf16.msra.mxu0 %v2386_v38  ;;  %1564 = vmatpush1.bf16.msra.mxu1 %v2389_v40 }
 0x112   : > { %v3040_v14 = vsub.s32 %v1696_v11, %v2850_v24 }
 0x114   : > { %1537 = vmatmul.mubr.bf16.vlgmr.msra.gmra.mrb[12].mxu0 %v2885_v50  ;;  %1578 = vmatmul.mubr.bf16.vlgmr.msra.gmra.mrb[12].mxu1 %v2885_v50  ;;  %v1194_v50 = vrot.slane %v415_v43, %v1193_v44 }
 0x16f   : > { %v1292_v48 = vpop.f32.mrb[0].mxu0  ;;  %v1333_v49 = vpop.f32.mrb[0].mxu1 }
 0x170   : > { %v1293_v51 = vadd.f32 %v1292_v48, %v1182_v45  ;;  %v1334_v52 = vadd.f32 %v1333_v49, %v1190_v46  ;;  %v1294_v53 = vpop.f32.mrb[1].mxu0  ;;  %v1335_v54 = vpop.f32.mrb[1].mxu1 }
 0x171   : > { %v1295_v55 = vadd.f32 %v1294_v53, %v1186_v47  ;;  %v1336_v56 = vadd.f32 %v1335_v54, %v1194_v50  ;;  %v1296_v57 = vpop.f32.mrb[2].mxu0  ;;  %v1337_v58 = vpop.f32.mrb[2].mxu1 }
 0x172   : > { %v2078_v59 = vmul.f32 -1.442695, %v1293_v51  ;;  %v2080_v60 = vmul.f32 -1.442695, %v1334_v52  ;;  %v1297_v61 = vpop.f32.mrb[3].mxu0  ;;  %v1338_v62 = vpop.f32.mrb[3].mxu1 }
 0x173   : > { %v2079_v63 = vmul.f32 -1.442695, %v1295_v55  ;;  %v2081_v0 = vmul.f32 -1.442695, %v1336_v56 }
 0x174   : > { %2390 = vpow2.f32 %v2078_v59 }
 0x175   : > { %2392 = vpow2.f32 %v2080_v60 }
 0x176   : > { %2394 = vpow2.f32 %v2079_v63 }
 0x177   : > { %2396 = vpow2.f32 %v2081_v0 }
 0x17e   : > { %v2391_v1 = vpop.eup %2390 }
 0x17f   : > { %v2393_v2 = vpop.eup %2392  ;;  %v1630_v3 = vadd.f32 1.0, %v2391_v1 }
 0x180   : > { %v2395_v4 = vpop.eup %2394  ;;  %v1632_v5 = vadd.f32 1.0, %v2393_v2 }
 0x181   : > { %v2397_v6 = vpop.eup %2396  ;;  %2398 = vrcp.f32 %v1630_v3  ;;  %v1631_v7 = vadd.f32 1.0, %v2395_v4  ;;  %v416_v4 = vld [vmem:[%s3029_s28 + $0x8] sm:$0xff] }
 0x182   : > { %2400 = vrcp.f32 %v1632_v5  ;;  %v1633_v8 = vadd.f32 1.0, %v2397_v6  ;;  %v1214_v6 = vrot.slane %v416_v4, %v2875_v41  ;;  %v1226_v9 = vrot.slane %v416_v4, %v1193_v44 }
 0x183   : > { %2402 = vrcp.f32 %v1631_v7  ;;  %v1222_v7 = vrot.slane %v416_v4, %v1189_v42 }
 0x184   : > { %2404 = vrcp.f32 %v1633_v8  ;;  %v1218_v8 = vrot.slane %v416_v4, %v2858_v30 }
 0x18b   : > { %v2399_v12 = vpop.eup %2398 }
 0x18c   : > { %v2401_v13 = vpop.eup %2400 }
 0x18d   : > { %v2403_v15 = vpop.eup %2402 }
 0x18e   : > { %v2405_v16 = vpop.eup %2404  ;;  %v1690_v17 = vcombine.low %v2399_v12, %v2403_v15 }
 0x18f   : > { %v1691_v18 = vcombine.low %v2401_v13, %v2405_v16 }
 0x190   : > { %v1700_v19 = vrot.slane %v1690_v17, %v3040_v14 }
 0x191   : > { %v1707_v22 = vrot.slane %v1691_v18, %v3040_v14 }
 0x193   : > { %v1722_v26 = vcombine.low %v1700_v19, %v1707_v22 }
 0x195   : > { %v1730_v10 = vrot.slane %v1722_v26, %v3040_v14 }
 0x197   : > { %v1374_v32 = vpop.f32.mrb[4].mxu0  ;;  %v1415_v33 = vpop.f32.mrb[4].mxu1 }
 0x198   : > { %v1375_v34 = vadd.f32 %v1374_v32, %v1198_v27  ;;  %v1416_v35 = vadd.f32 %v1415_v33, %v1206_v28  ;;  %v1376_v36 = vpop.f32.mrb[5].mxu0  ;;  %v1417_v37 = vpop.f32.mrb[5].mxu1 }
 0x199   : > { %v1377_v38 = vadd.f32 %v1376_v36, %v1202_v29  ;;  %v1418_v40 = vadd.f32 %v1417_v37, %v1210_v31  ;;  %v1378_v45 = vpop.f32.mrb[6].mxu0  ;;  %v1419_v46 = vpop.f32.mrb[6].mxu1 }
 0x19a   : > { %v2082_v47 = vmul.f32 -1.442695, %v1375_v34  ;;  %v2084_v50 = vmul.f32 -1.442695, %v1416_v35  ;;  %v1379_v48 = vpop.f32.mrb[7].mxu0  ;;  %v1420_v49 = vpop.f32.mrb[7].mxu1 }
 0x19b   : > { %v2083_v51 = vmul.f32 -1.442695, %v1377_v38  ;;  %v2085_v52 = vmul.f32 -1.442695, %v1418_v40 }
 0x19c   : > { %2406 = vpow2.f32 %v2082_v47 }
 0x19d   : > { %2408 = vpow2.f32 %v2084_v50 }
 0x19e   : > { %2410 = vpow2.f32 %v2083_v51 }
 0x19f   : > { %2412 = vpow2.f32 %v2085_v52 }
 0x1a6   : > { %v2407_v43 = vpop.eup %2406 }
 0x1a7   : > { %v2409_v53 = vpop.eup %2408  ;;  %v1634_v54 = vadd.f32 1.0, %v2407_v43  ;;  %v1230_v43 = vrot.slane %v416_v4, %v1197_v39 }
 0x1a8   : > { %v2411_v55 = vpop.eup %2410  ;;  %v1636_v56 = vadd.f32 1.0, %v2409_v53  ;;  %v1238_v53 = vrot.slane %v416_v4, %v1205_v21 }
 0x1a9   : > { %v2413_v57 = vpop.eup %2412  ;;  %2414 = vrcp.f32 %v1634_v54  ;;  %v1635_v58 = vadd.f32 1.0, %v2411_v55  ;;  %v1234_v54 = vrot.slane %v416_v4, %v1201_v23 }
 0x1aa   : > { %2416 = vrcp.f32 %v1636_v56  ;;  %v1637_v59 = vadd.f32 1.0, %v2413_v57 }
 0x1ab   : > { %2418 = vrcp.f32 %v1635_v58 }
 0x1ac   : > { %2420 = vrcp.f32 %v1637_v59 }
 0x1b3   : > { %v2415_v60 = vpop.eup %2414 }
 0x1b4   : > { %v2417_v61 = vpop.eup %2416 }
 0x1b5   : > { %v2419_v62 = vpop.eup %2418 }
 0x1b6   : > { %v2421_v63 = vpop.eup %2420  ;;  %v1692_v0 = vcombine.low %v2415_v60, %v2419_v62 }
 0x1b7   : > { %v1693_v1 = vcombine.low %v2417_v61, %v2421_v63 }
 0x1b8   : > { %v1714_v2 = vrot.slane %v1692_v0, %v3040_v14 }
 0x1b9   : > { %v1721_v3 = vrot.slane %v1693_v1, %v3040_v14 }
 0x1bb   : > { %v1723_v5 = vcombine.low %v1714_v2, %v1721_v3 }
 0x1bd   : > { %v1737_v11 = vrot.slane %v1723_v5, %v3040_v14 }
 0x1bf   : > { %v1456_v12 = vpop.f32.mrb[8].mxu0  ;;  %v1497_v13 = vpop.f32.mrb[8].mxu1  ;;  %v1738_v15 = vcombine.low %v1730_v10, %v1737_v11 }
 0x1c0   : > { %v1457_v16 = vadd.f32 %v1456_v12, %v1214_v6  ;;  %v1498_v17 = vadd.f32 %v1497_v13, %v1222_v7  ;;  %v1458_v18 = vpop.f32.mrb[9].mxu0  ;;  %v1499_v41 = vpop.f32.mrb[9].mxu1 }
 0x1c1   : > { %v1459_v19 = vadd.f32 %v1458_v18, %v1218_v8  ;;  %v1500_v22 = vadd.f32 %v1499_v41, %v1226_v9  ;;  %v1460_v42 = vpop.f32.mrb[10].mxu0  ;;  %v1501_v25 = vpop.f32.mrb[10].mxu1  ;;  %1789 = vst [vmem:[%s3067_s4] sm:$0xff] %v1738_v15 }
 0x1c2   : > { %v2086_v30 = vmul.f32 -1.442695, %v1457_v16  ;;  %v2088_v44 = vmul.f32 -1.442695, %v1498_v17  ;;  %v1461_v26 = vpop.f32.mrb[11].mxu0  ;;  %v1502_v27 = vpop.f32.mrb[11].mxu1 }
 0x1c3   : > { %v2087_v28 = vmul.f32 -1.442695, %v1459_v19  ;;  %v2089_v29 = vmul.f32 -1.442695, %v1500_v22 }
 0x1c4   : > { %2422 = vpow2.f32 %v2086_v30 }
 0x1c5   : > { %2424 = vpow2.f32 %v2088_v44 }
 0x1c6   : > { %2426 = vpow2.f32 %v2087_v28 }
 0x1c7   : > { %2428 = vpow2.f32 %v2089_v29 }
 0x1ce   : > { %v2423_v31 = vpop.eup %2422 }
 0x1cf   : > { %v2425_v32 = vpop.eup %2424  ;;  %v1638_v33 = vadd.f32 1.0, %v2423_v31 }
 0x1d0   : > { %v2427_v34 = vpop.eup %2426  ;;  %v1640_v35 = vadd.f32 1.0, %v2425_v32 }
 0x1d1   : > { %v2429_v36 = vpop.eup %2428  ;;  %2430 = vrcp.f32 %v1638_v33  ;;  %v1639_v37 = vadd.f32 1.0, %v2427_v34 }
 0x1d2   : > { %2432 = vrcp.f32 %v1640_v35  ;;  %v1641_v38 = vadd.f32 1.0, %v2429_v36 }
 0x1d3   : > { %2434 = vrcp.f32 %v1639_v37 }
 0x1d4   : > { %2436 = vrcp.f32 %v1641_v38 }
 0x1db   : > { %v2431_v40 = vpop.eup %2430 }
 0x1dc   : > { %v2433_v45 = vpop.eup %2432 }
 0x1dd   : > { %v2435_v46 = vpop.eup %2434 }
 0x1de   : > { %v2437_v47 = vpop.eup %2436  ;;  %v1739_v50 = vcombine.low %v2431_v40, %v2435_v46 }
 0x1df   : > { %v1740_v48 = vcombine.low %v2433_v45, %v2437_v47 }
 0x1e0   : > { %v1748_v49 = vrot.slane %v1739_v50, %v3040_v14 }
 0x1e1   : > { %v1755_v51 = vrot.slane %v1740_v48, %v3040_v14 }
 0x1e3   : > { %v1770_v52 = vcombine.low %v1748_v49, %v1755_v51 }
 0x1e5   : > { %v1778_v15 = vrot.slane %v1770_v52, %v3040_v14 }
 0x1e7   : > { %v1538_v55 = vpop.f32.mrb[12].mxu0  ;;  %v1579_v56 = vpop.f32.mrb[12].mxu1 }
 0x1e8   : > { %v1539_v57 = vadd.f32 %v1538_v55, %v1230_v43  ;;  %v1580_v58 = vadd.f32 %v1579_v56, %v1238_v53  ;;  %v1540_v59 = vpop.f32.mrb[13].mxu0  ;;  %v1581_v60 = vpop.f32.mrb[13].mxu1 }
 0x1e9   : > { %v1541_v61 = vadd.f32 %v1540_v59, %v1234_v54  ;;  %v1542_v62 = vpop.f32.mrb[14].mxu0  ;;  %v1582_v63 = vpop.f32.mrb[14].mxu1 }
 0x1ea   : > { %v2090_v0 = vmul.f32 -1.442695, %v1539_v57  ;;  %v2092_v1 = vmul.f32 -1.442695, %v1580_v58  ;;  %v1543_v2 = vpop.f32.mrb[15].mxu0  ;;  %v1583_v3 = vpop.f32.mrb[15].mxu1 }
 0x1eb   : > { %v2091_v39 = vmul.f32 -1.442695, %v1541_v61 }
 0x1ec   : > { %2438 = vpow2.f32 %v2090_v0 }
 0x1ed   : > { %2440 = vpow2.f32 %v2092_v1 }
 0x1ee   : > { %2442 = vpow2.f32 %v2091_v39 }
 0x1f6   : > { %v2439_v21 = vpop.eup %2438 }
 0x1f7   : > { %v2441_v24 = vpop.eup %2440  ;;  %v1642_v23 = vadd.f32 1.0, %v2439_v21 }
 0x1f8   : > { %v2443_v4 = vpop.eup %2442  ;;  %v1644_v5 = vadd.f32 1.0, %v2441_v24 }
 0x1f9   : > { %2444 = vrcp.f32 %v1642_v23  ;;  %v1643_v6 = vadd.f32 1.0, %v2443_v4 }
 0x1fa   : > { %2446 = vrcp.f32 %v1644_v5 }
 0x1fb   : > { %2448 = vrcp.f32 %v1643_v6 }
 0x203   : > { %v2445_v7 = vpop.eup %2444 }
 0x204   : > { %v2447_v8 = vpop.eup %2446 }
 0x205   : > { %v2449_v9 = vpop.eup %2448  ;;  %v1769_v10 = vrot.slane %v2447_v8, %v3040_v14 }
 0x206   : > { %v1741_v11 = vcombine.low %v2445_v7, %v2449_v9 }
 0x208   : > { %v1762_v12 = vrot.slane %v1741_v11, %v3040_v14 }
 0x20a   : > { %v1771_v13 = vcombine.low %v1762_v12, %v1769_v10 }
 0x20c   : > { %v1785_v16 = vrot.slane %v1771_v13, %v3040_v14 }
 0x20e   : > { %v1786_v17 = vcombine.low %v1778_v15, %v1785_v16 }
 0x210   : > { %1794 = vst.msk [vmem:[%s3067_s4 + $0x8] sm:$0x7f] %vm1792_vm1, %v1786_v17 }
 0x211   : > { %2551 = shalt.err (!%p2548_p1)
}
 0x212   : > { %s2552_s7 = scalar_lea.hbm %s3088_s9, 240  ;;  %s2556_s23 = scalar_lea.hbm %s3136_s3, 480 }
 0x213   : > { %p2553_p6 = scmp.ne.s32.totalorder %s3088_s9, %s2552_s7  ;;  %p2557_p7 = scmp.lt.u32.totalorder %s3088_s9, %s3136_s3 }
 0x214   : > { %p2558_p9 = scmp.lt.u32.totalorder %s2556_s23, %s2552_s7  ;;  %p2560_p12 = scmp.lt.u32.totalorder %s2552_s7, %s3088_s9 }
 0x215   : > { %p2554_p5 = pnand %p2553_p6, %p3157_p4 }
 0x216   : > { %p2559_p10 = por %p2558_p9, %p2557_p7 }
 0x217   : > { %p2555_p2 = pneg %p2554_p5 }
 0x218   : > { %p2561_p0 = por %p2560_p12, %p2559_p10 }
 0x21a   : > { %p2562_p11 = pnand %p2561_p0, %p2555_p2 }
 0x21c   : > { %2565 = shalt.err (!%p2562_p11)
}
 0x21d   : > { %2111 = dma.vmem_to_hbm [thread:$0]  (%p3157_p4), %s3090_s20, 240, %s3088_s9, %s1796_s25  }
 0x21e PF: > { %s1822_s30 = sand.u32 1, %s2596_s12   ;;  %p3158_p13 = scmp.ne.s32.totalorder %s3147_s29, 0 }
 0x21f   : > { %p3159_p3 = scmp.ge.s32.totalorder %s2608_s15, 2  ;;  %s1823_s28 = scalar_lea.sflag [#allocation4], %s1822_s30 }
 0x221   : > { %p2125_p8 = pnand %p3159_p3, %p3158_p13 }
 0x223   : > { %2591 = dma.done.wait (!%p2125_p8), %s1823_s28, 240  }
 0x224   : > { %2593 = vsyncadd (!%p2125_p8), %s1823_s28, 4294967056  ;;  %p17_p1 = scmp.ge.s32.totalorder %s2660_s16, 4   ;;  %s3160_s12 = smov %s2600_s13 }
 0x225   : > { %s3161_s13 = smov %s2604_s14  ;;  %s3162_s14 = smov %s2671_s19 }
 0x226   : > { %s3163_s15 = smov %s2660_s16  ;;  %19 = sbr.rel (!%p17_p1) target bundleno = 6 (0x6), region = 93 }
 0x22d   :  { %1828 = vsyncpa [#allocation3], 1 }
 0x22e   :  { %1830 = vsyncpa [#allocation3 + $0x1], 1 }
 0x22f   :  { %1831 = vsyncpa [#allocation6], 1 }
 0x230   :  { %1833 = vsyncpa [#allocation6 + $0x1], 1 }
 0x231   :  { %1834 = vsyncpa [#allocation4], 1 }
 0x232   :  { %1836 = vsyncpa [#allocation4 + $0x1], 1 }

</bundles_post_ra>
